<compile_context>
chip_gen: v5e
topology: v5e:2x2
jax: 0.10.0
libtpu: 0.0.40
codegen_flags: <defaults>
</compile_context>

<pallas_src>
import functools

import jax
import jax.numpy as jnp
from jax.experimental import pallas as pl
from jax.experimental.pallas import tpu as pltpu


W1_ROWS = 16  # layer-1 weight rows padded to a bf16 sublane-pack boundary


def _round_up(n, m):
    return ((n + m - 1) // m) * m


def policy_kernel(x_ref, w_ref, b_ref, out_ref, *, state_space, hidden):
    """Fused actor+critic MLP: 3 lane-dense MXU matmuls with f32 accumulation."""
    H2 = 2 * hidden
    cd = w_ref.dtype                                   # bf16 (prod) / f32 (parity)

    x = x_ref[...].astype(cd)                          # (TB, S)

    w1 = w_ref[0:state_space, :]                       # (S, 128)
    w2 = w_ref[W1_ROWS:W1_ROWS + H2, :]                # (128, 128)
    w3 = w_ref[W1_ROWS + H2:W1_ROWS + 2 * H2, :]       # (128, 128)
    b1 = b_ref[0:1, :]                                 # (1, 128) f32
    b2 = b_ref[1:2, :]
    b3 = b_ref[2:3, :]

    # f32 accumulate -> f32 bias add + tanh -> cast only the next MXU operand.
    h = jnp.tanh(jnp.dot(x, w1, preferred_element_type=jnp.float32) + b1)
    h = jnp.tanh(jnp.dot(h.astype(cd), w2,
                         preferred_element_type=jnp.float32) + b2)
    out = jnp.dot(h.astype(cd), w3, preferred_element_type=jnp.float32) + b3
    out_ref[...] = out.astype(out_ref.dtype)           # (TB, 128) unmasked store


def pack_params(params, state_space, *, hidden=64, weight_dtype=jnp.bfloat16):
    """Pack all Linear weights into one (272, 128) slab + a (8, 128) f32 bias slab.

    Weight slab rows:
      [0,   16)  W1 = [W1a | W1c]          (state rows, zero-padded to 16)
      [16, 144)  W2 = blockdiag(W2a, W2c)
      [144,272)  W3 = [[W3a, 0], [0, W3c]] (cols 0..A-1 = mean, col A = value)
    Bias slab rows: 0 = b1, 1 = b2, 2 = b3 (actor lanes 0..63, critic 64..127).
    Build once per parameter update; the kernel re-uses it across calls.
    """
    H2 = 2 * hidden
    A = params["w3a"].shape[1]
    assert state_space <= W1_ROWS
    assert A + 1 <= H2

    rows = W1_ROWS + 2 * H2
    w = jnp.zeros((rows, H2), dtype=jnp.float32)

    # layer 1
    w = w.at[:state_space, :hidden].set(params["w1a"])
    w = w.at[:state_space, hidden:].set(params["w1c"])
    # layer 2 (block diagonal)
    w = w.at[W1_ROWS:W1_ROWS + hidden, :hidden].set(params["w2a"])
    w = w.at[W1_ROWS + hidden:W1_ROWS + H2, hidden:].set(params["w2c"])
    # layer 3
    r3 = W1_ROWS + H2
    w = w.at[r3:r3 + hidden, :A].set(params["w3a"])
    w = w.at[r3 + hidden:r3 + H2, A:A + 1].set(params["w3c"])

    b = jnp.zeros((8, H2), dtype=jnp.float32)           # biases stay f32
    b = b.at[0, :hidden].set(params["b1a"])
    b = b.at[0, hidden:].set(params["b1c"])
    b = b.at[1, :hidden].set(params["b2a"])
    b = b.at[1, hidden:].set(params["b2c"])
    b = b.at[2, :A].set(params["b3a"])
    b = b.at[2, A].set(params["b3c"][0])

    return w.astype(weight_dtype), b


def policy_forward(x, w_slab, b_slab, sigma_param, *, hidden=64,
                   block_batch=256):
    """Returns (action_mean (B,A), sigma (A,), value (B,)).

    `w_slab`, `b_slab` come from pack_params (bf16 weights recommended on all
    TPU generations; pass weight_dtype=jnp.float32 for exact f32 parity — f32
    MXU operands are decomposed into multiple bf16-precision passes on
    v5e/v6e/v7x and are ~3-6x slower).  The Normal(action_mean, sigma)
    distribution is constructed by the caller.
    """
    B, S = x.shape
    A = sigma_param.shape[0]
    H2 = 2 * hidden
    w_rows = W1_ROWS + 2 * H2
    assert w_slab.shape == (w_rows, H2)
    assert b_slab.shape == (8, H2)

    tb = min(block_batch, _round_up(B, 8))   # batch tile (sublane aligned)
    nb = pl.cdiv(B, tb)
    bg = nb * tb

    out = pl.pallas_call(
        functools.partial(policy_kernel, state_space=S, hidden=hidden),
        out_shape=jax.ShapeDtypeStruct((bg, H2), jnp.float32),
        grid=(nb,),
        in_specs=[
            pl.BlockSpec((tb, S), lambda i: (i, 0)),        # batch-tiled x (unpadded)
            pl.BlockSpec((w_rows, H2), lambda i: (0, 0)),   # weights: VMEM-resident
            pl.BlockSpec((8, H2), lambda i: (0, 0)),        # f32 biases: VMEM-resident
        ],
        out_specs=pl.BlockSpec((tb, H2), lambda i: (i, 0)),
        compiler_params=pltpu.CompilerParams(
            dimension_semantics=("parallel",)),             # v7x: 2 TCs split batch
    )(x, w_slab, b_slab)

    mean = out[:B, :A]
    value = out[:B, A]
    sigma = jax.nn.softplus(sigma_param)                    # stable; outside kernel
    return mean, sigma, value


def init_params(key, state_space, action_space, hidden=64):
    """Mirrors Policy.init_weights: weights ~ N(0,1), biases zero, sigma=0.5.

    Weights are stored transposed (in, out) for the x @ W convention; biases
    are 1-D (out,)."""
    ks = jax.random.split(key, 6)

    def lin(k, fan_in, fan_out):
        w = jax.random.normal(k, (fan_out, fan_in), dtype=jnp.float32).T
        b = jnp.zeros((fan_out,), dtype=jnp.float32)
        return w, b

    w1a, b1a = lin(ks[0], state_space, hidden)
    w2a, b2a = lin(ks[1], hidden, hidden)
    w3a, b3a = lin(ks[2], hidden, action_space)
    w1c, b1c = lin(ks[3], state_space, hidden)
    w2c, b2c = lin(ks[4], hidden, hidden)
    w3c, b3c = lin(ks[5], hidden, 1)
    sigma = jnp.full((action_space,), 0.5, dtype=jnp.float32)

    return dict(w1a=w1a, b1a=b1a, w2a=w2a, b2a=b2a, w3a=w3a, b3a=b3a,
                sigma=sigma,
                w1c=w1c, b1c=b1c, w2c=w2c, b2c=b2c, w3c=w3c, b3c=b3c)


def policy_reference(x, params):
    """Plain-JAX reference for sanity checking (unfused, f32)."""
    h = jnp.tanh(x @ params["w1a"] + params["b1a"])
    h = jnp.tanh(h @ params["w2a"] + params["b2a"])
    mean = h @ params["w3a"] + params["b3a"]
    sigma = jax.nn.softplus(params["sigma"])
    v = jnp.tanh(x @ params["w1c"] + params["b1c"])
    v = jnp.tanh(v @ params["w2c"] + params["b2c"])
    value = (v @ params["w3c"] + params["b3c"])[:, 0]
    return mean, sigma, value


# TODO(synk): torch.distributions.Normal has no in-kernel equivalent; the
# kernel returns (mean, sigma) and the caller builds the distribution.

if __name__ == "__main__":
    key = jax.random.PRNGKey(0)
    kx, kp = jax.random.split(key)

    batch, state_space, action_space = 8, 6, 3
    x = jax.random.normal(kx, (batch, state_space), dtype=jnp.float32)
    params = init_params(kp, state_space, action_space, hidden=64)
    ref_mean, ref_sigma, ref_value = policy_reference(x, params)

    # ---- production path: bf16 weight slab, f32 accumulation ----
    w_bf16, b_f32 = pack_params(params, state_space, hidden=64)
    mean, sigma, value = policy_forward(x, w_bf16, b_f32, params["sigma"],
                                        hidden=64)
    jax.block_until_ready((mean, sigma, value))

    assert mean.shape == (batch, action_space)
    assert sigma.shape == (action_space,)
    assert value.shape == (batch,)
    assert jnp.allclose(sigma, ref_sigma, atol=1e-5, rtol=1e-5)
    # bf16 operands with f32 accumulation: loose tolerance vs f32 reference.
    assert jnp.allclose(mean, ref_mean, atol=0.5, rtol=0.05)
    assert jnp.allclose(value, ref_value, atol=0.5, rtol=0.05)

    # ---- exact-parity path: f32 weight slab ----
    w_f32, b_f32b = pack_params(params, state_space, hidden=64,
                                weight_dtype=jnp.float32)
    mean32, sigma32, value32 = policy_forward(x, w_f32, b_f32b,
                                              params["sigma"], hidden=64)
    jax.block_until_ready((mean32, sigma32, value32))
    assert jnp.allclose(mean32, ref_mean, atol=1e-4, rtol=1e-4)
    assert jnp.allclose(sigma32, ref_sigma, atol=1e-5, rtol=1e-5)
    assert jnp.allclose(value32, ref_value, atol=1e-4, rtol=1e-4)

    print("KERNEL_OK")
</pallas_src>

<mosaic_0001>
module attributes {stable_mosaic.version = 11 : i64} {
  func.func @policy_kernel(%arg0: i32, %arg1: memref<8x6xf32, #tpu.memory_space<vmem>>, %arg2: memref<272x128xbf16, #tpu.memory_space<vmem>>, %arg3: memref<8x128xf32, #tpu.memory_space<vmem>>, %arg4: memref<8x128xf32, #tpu.memory_space<vmem>>) attributes {dimension_semantics = [#tpu.dimension_semantics<parallel>], iteration_bounds = array<i64: 1>, scalar_prefetch = 0 : i64, scratch_operands = 0 : i64, tpu.core_type = #tpu.core_type<tc>, window_params = [{transform_indices = @transform_0, window_bounds = array<i64: 8, 6>}, {pipeline_mode = #tpu.pipeline_mode<synchronous>, transform_indices = @transform_1, window_bounds = array<i64: 272, 128>}, {pipeline_mode = #tpu.pipeline_mode<synchronous>, transform_indices = @transform_2, window_bounds = array<i64: 8, 128>}, {transform_indices = @transform_3, window_bounds = array<i64: 8, 128>}]} {
    %c0 = arith.constant 0 : index
    %c0_0 = arith.constant 0 : index
    %0 = vector.load %arg1[%c0, %c0_0] : memref<8x6xf32, #tpu.memory_space<vmem>>, vector<8x6xf32>
    %1 = arith.truncf %0 : vector<8x6xf32> to vector<8x6xbf16>
    %c0_1 = arith.constant 0 : index
    %c0_2 = arith.constant 0 : index
    %2 = vector.load %arg2[%c0_1, %c0_2] : memref<272x128xbf16, #tpu.memory_space<vmem>>, vector<6x128xbf16>
    %c16 = arith.constant 16 : index
    %c0_3 = arith.constant 0 : index
    %3 = vector.load %arg2[%c16, %c0_3] : memref<272x128xbf16, #tpu.memory_space<vmem>>, vector<128x128xbf16>
    %c144 = arith.constant 144 : index
    %c0_4 = arith.constant 0 : index
    %4 = vector.load %arg2[%c144, %c0_4] : memref<272x128xbf16, #tpu.memory_space<vmem>>, vector<128x128xbf16>
    %c0_5 = arith.constant 0 : index
    %c0_6 = arith.constant 0 : index
    %5 = vector.load %arg3[%c0_5, %c0_6] : memref<8x128xf32, #tpu.memory_space<vmem>>, vector<1x128xf32>
    %c1 = arith.constant 1 : index
    %c0_7 = arith.constant 0 : index
    %6 = vector.load %arg3[%c1, %c0_7] : memref<8x128xf32, #tpu.memory_space<vmem>>, vector<1x128xf32>
    %c2 = arith.constant 2 : index
    %c0_8 = arith.constant 0 : index
    %7 = vector.load %arg3[%c2, %c0_8] : memref<8x128xf32, #tpu.memory_space<vmem>>, vector<1x128xf32>
    %cst = arith.constant dense<0.000000e+00> : vector<8x128xf32>
    %8 = tpu.matmul %1, %2, %cst {dimension_numbers = #tpu.dot_dimension_numbers<[1], [0], [0], [1], [0, 0, 1, 1], [], []>} : vector<8x6xbf16>, vector<6x128xbf16>, vector<8x128xf32> -> vector<8x128xf32>
    %9 = vector.broadcast %5 : vector<1x128xf32> to vector<8x128xf32>
    %10 = arith.addf %8, %9 : vector<8x128xf32>
    %11 = math.tanh %10 : vector<8x128xf32>
    %12 = arith.truncf %11 : vector<8x128xf32> to vector<8x128xbf16>
    %cst_9 = arith.constant dense<0.000000e+00> : vector<8x128xf32>
    %13 = tpu.matmul %12, %3, %cst_9 {dimension_numbers = #tpu.dot_dimension_numbers<[1], [0], [0], [1], [0, 0, 1, 1], [], []>} : vector<8x128xbf16>, vector<128x128xbf16>, vector<8x128xf32> -> vector<8x128xf32>
    %14 = vector.broadcast %6 : vector<1x128xf32> to vector<8x128xf32>
    %15 = arith.addf %13, %14 : vector<8x128xf32>
    %16 = math.tanh %15 : vector<8x128xf32>
    %17 = arith.truncf %16 : vector<8x128xf32> to vector<8x128xbf16>
    %cst_10 = arith.constant dense<0.000000e+00> : vector<8x128xf32>
    %18 = tpu.matmul %17, %4, %cst_10 {dimension_numbers = #tpu.dot_dimension_numbers<[1], [0], [0], [1], [0, 0, 1, 1], [], []>} : vector<8x128xbf16>, vector<128x128xbf16>, vector<8x128xf32> -> vector<8x128xf32>
    %19 = vector.broadcast %7 : vector<1x128xf32> to vector<8x128xf32>
    %20 = arith.addf %18, %19 : vector<8x128xf32>
    %c0_11 = arith.constant 0 : index
    %c0_12 = arith.constant 0 : index
    %21 = vector.load %arg4[%c0_11, %c0_12] : memref<8x128xf32, #tpu.memory_space<vmem>>, vector<8x128xf32>
    tpu.vector_store %arg4[%c0_11, %c0_12], %20 {strides = array<i32>} : memref<8x128xf32, #tpu.memory_space<vmem>>, vector<8x128xf32>,
    return
  }
  func.func @transform_0(%arg0: i32) -> (i32, i32) {
    %c0_i32 = arith.constant 0 : i32
    %c0_i32_0 = arith.constant 0 : i32
    return %arg0, %c0_i32 : i32, i32
  }
  func.func @transform_1(%arg0: i32) -> (i32, i32) {
    %c0_i32 = arith.constant 0 : i32
    %c0_i32_0 = arith.constant 0 : i32
    %c0_i32_1 = arith.constant 0 : i32
    return %c0_i32, %c0_i32_0 : i32, i32
  }
  func.func @transform_2(%arg0: i32) -> (i32, i32) {
    %c0_i32 = arith.constant 0 : i32
    %c0_i32_0 = arith.constant 0 : i32
    %c0_i32_1 = arith.constant 0 : i32
    return %c0_i32, %c0_i32_0 : i32, i32
  }
  func.func @transform_3(%arg0: i32) -> (i32, i32) {
    %c0_i32 = arith.constant 0 : i32
    %c0_i32_0 = arith.constant 0 : i32
    return %arg0, %c0_i32 : i32, i32
  }
}

</mosaic_0001>

<bundles_post_ra>
// kernel: tpu_custom_call.1
= control target key start
LH: loop header
LB: loop body
LE: loop exit
PB: predicated region body
PF: predicated region fallthrough
CT: control target
= control target key end

     0   :  { %8 = vsyncpa [#allocation3], 0  ;;  %s500_s0 = inlined_call_operand.hbm [shape: f32[8,6], index: 0, kind: input, shape index: {}]   ;;  %s501_s1 = inlined_call_operand.hbm [shape: bf16[272,128], index: 1, kind: input, shape index: {}]   ;;  %s502_s2 = inlined_call_operand.hbm [shape: f32[8,128], index: 2, kind: input, shape index: {}]   ;;  %s503_s3 = inlined_call_operand.hbm [shape: f32[8,128], index: 3, kind: output, shape index: {}]  }
   0x1   :  { %9 = vsyncpa [#allocation6], 0  ;;  %s26_s14 = sshll.u32 %s501_s1, 4  ;;  %s27_s14 = int_to_ptr.hbm [resolvable:$true] %s26_s14 }
   0x2   :  { %10 = vsyncpa [#allocation4], 0  ;;  %s462_s15 = smov [#allocation5]   ;;  %s16_s19 = sshll.u32 %s500_s0, 4  ;;  %s17_s19 = int_to_ptr.hbm [resolvable:$true] %s16_s19 }
   0x3   :  { %s28_s16 = sshll.u32 %s462_s15, 4  ;;  %s463_s20 = smov 64   ;;  %s29_s16 = int_to_ptr.vmem [resolvable:$true] %s28_s16 }
   0x4   :  { %s464_s21 = smov 4   ;;  %s465_s22 = smov [#allocation2]  }
   0x5   :  { %34 = dma.hbm_to_vmem [thread:$0]  %s27_s14, 2176, %s29_s16, [#allocation6], %s463_s20, %s463_s20, %s464_s21  }
   0x6   :  { %s18_s23 = sshll.u32 %s465_s22, 4  ;;  %s40_s26 = sshll.u32 %s502_s2, 4  ;;  %s19_s23 = int_to_ptr.vmem [resolvable:$true] %s18_s23  ;;  %s41_s26 = int_to_ptr.hbm [resolvable:$true] %s40_s26 }
   0x7   :  { %21 = dma.hbm_to_vmem [thread:$0]  %s17_s19, 128, %s19_s23, [#allocation3]  }
   0x8   :  { %s466_s1 = smov [#allocation7]  }
   0x9   :  { %s42_s27 = sshll.u32 %s466_s1, 4  ;;  %s43_s27 = int_to_ptr.vmem [resolvable:$true] %s42_s27 }
   0xa   :  { %45 = dma.hbm_to_vmem [thread:$0]  %s41_s26, 128, %s43_s27, [#allocation6]  }
   0xb   :  { %456 = dma.done.wait [#allocation3], 128  }
   0xc   :  { %457 = vsyncadd [#allocation3], 4294967168 }
   0xd   :  { %458 = dma.done.wait [#allocation6], 2304  }
   0xe   :  { %459 = vsyncadd [#allocation6], 4294964992  ;;  %vm102_vm0 = vcmask 1042432   ;;  %v61_v0 = vld [vmem:[#allocation5] sm:$0x7]  ;;  %v59_v1 = vld [vmem:[#allocation2] sm:$0xff] }
   0xf   :  { %v338_v2 = vld [vmem:[#allocation5 + $0x40] sm:$0xff]  ;;  %v104_v3 = vsel %vm102_vm0, %v61_v0, 0  ;;  %v60_v4 = vpack.c.bf16 %v59_v1, %v59_v1  ;;  %vm98_vm1 = vcmask 48128   ;;  %v337_v5 = vld [vmem:[#allocation5 + $0x38] sm:$0xff]  ;;  %v336_v6 = vld [vmem:[#allocation5 + $0x30] sm:$0xff]  ;;  %s467_s0 = smov [#allocation8]  }
  0x10   :  { %113 = vmatpush.bf16.msra.mxu0 %v104_v3  ;;  %170 = vmatpush.bf16.msra.mxu1 %v338_v2  ;;  %v335_v7 = vld [vmem:[#allocation5 + $0x28] sm:$0xff]  ;;  %v334_v8 = vld [vmem:[#allocation5 + $0x20] sm:$0xff]  ;;  %v333_v9 = vld [vmem:[#allocation5 + $0x18] sm:$0xff]  ;;  %s253_s2 = sshll.u32 %s467_s0, 4  ;;  %s255_s30 = sshll.u32 %s503_s3, 4  ;;  %s254_s2 = int_to_ptr.vmem [resolvable:$true] %s253_s2  ;;  %s256_s30 = int_to_ptr.hbm [resolvable:$true] %s255_s30 }
  0x11   :  { %v332_v10 = vld [vmem:[#allocation5 + $0x10] sm:$0xff]  ;;  %v331_v11 = vld [vmem:[#allocation5 + $0x8] sm:$0xff]  ;;  %v346_v12 = vld [vmem:[#allocation5 + $0x80] sm:$0xff] }
  0x12   :  { %234 = vmatpush.bf16.msra.mxu2 %v346_v12  ;;  %v345_v13 = vld [vmem:[#allocation5 + $0x78] sm:$0xff]  ;;  %v344_v14 = vld [vmem:[#allocation5 + $0x70] sm:$0xff]  ;;  %v343_v15 = vld [vmem:[#allocation5 + $0x68] sm:$0xff] }
  0x13   :  { %266 = vmatmul.msk.bf16.vlgmr.msra.gmra.mxu0 %vm98_vm1, %v60_v4  ;;  %v342_v16 = vld [vmem:[#allocation5 + $0x60] sm:$0xff]  ;;  %v353_v17 = vld [vmem:[#allocation7] ss:$0 sm:$0xff]  ;;  %v341_v23 = vld [vmem:[#allocation5 + $0x58] sm:$0xff] }
  0x14   :  { %171 = vmatpush.bf16.msra.mxu1 %v337_v5  ;;  %v340_v24 = vld [vmem:[#allocation5 + $0x50] sm:$0xff]  ;;  %v339_v25 = vld [vmem:[#allocation5 + $0x48] sm:$0xff] }
  0x15   :  { %v354_v26 = vld [vmem:[#allocation7 + $0x1] ss:$0 sm:$0xff]  ;;  %v355_v32 = vld [vmem:[#allocation7 + $0x2] ss:$0 sm:$0xff] }
  0x16   :  { %235 = vmatpush.bf16.msra.mxu2 %v345_v13 }
  0x18   :  { %172 = vmatpush.bf16.msra.mxu1 %v336_v6 }
  0x1a   :  { %236 = vmatpush.bf16.msra.mxu2 %v344_v14 }
  0x1c   :  { %173 = vmatpush.bf16.msra.mxu1 %v335_v7 }
  0x1e   :  { %237 = vmatpush.bf16.msra.mxu2 %v343_v15 }
  0x20   :  { %174 = vmatpush.bf16.msra.mxu1 %v334_v8 }
  0x22   :  { %238 = vmatpush.bf16.msra.mxu2 %v342_v16 }
  0x24   :  { %175 = vmatpush.bf16.msra.mxu1 %v333_v9 }
  0x26   :  { %239 = vmatpush.bf16.msra.mxu2 %v341_v23 }
  0x28   :  { %176 = vmatpush.bf16.msra.mxu1 %v332_v10 }
  0x2a   :  { %240 = vmatpush.bf16.msra.mxu2 %v340_v24 }
  0x2c   :  { %177 = vmatpush.bf16.msra.mxu1 %v331_v11 }
  0x2e   :  { %241 = vmatpush.bf16.msra.mxu2 %v339_v25 }
  0x90   :  { %v115_v18 = vpop.f32.mrf.mxu0 }
  0x91   :  { %v116_v19 = vadd.f32 %v353_v17, %v115_v18 }
  0x93   :  { %356 = vtanh.f32 %v116_v19 }
  0x98   :  { %v117_v20 = vpop.f32.mrf.mxu0 }
  0x99   :  { %v357_v21 = vpop.eup %356 }
  0x9a   :  { %v120_v22 = vpack.c.bf16 %v357_v21, %v357_v21 }
  0x9c   :  { %178 = vmatmul.bf16.vlgmr.msra.gmra.mxu1 %v120_v22 }
 0x119   :  { %v179_v27 = vpop.f32.mrf.mxu1 }
 0x11a   :  { %v180_v28 = vadd.f32 %v354_v26, %v179_v27 }
 0x11c   :  { %358 = vtanh.f32 %v180_v28 }
 0x121   :  { %v181_v29 = vpop.f32.mrf.mxu1 }
 0x122   :  { %v359_v30 = vpop.eup %358 }
 0x123   :  { %v184_v31 = vpack.c.bf16 %v359_v30, %v359_v30 }
 0x125   :  { %242 = vmatmul.bf16.vlgmr.msra.gmra.mxu2 %v184_v31 }
 0x1a8   :  { %v243_v33 = vpop.f32.mrf.mxu2 }
 0x1a9   :  { %v244_v34 = vadd.f32 %v355_v32, %v243_v33 }
 0x1ab   :  { %247 = vst [vmem:[#allocation8] sm:$0xff] %v244_v34 }
 0x1ac   :  { %258 = dma.vmem_to_hbm [thread:$0]  %s254_s2, 128, %s256_s30, [#allocation4]  }
 0x1b0   :  { %v245_v35 = vpop.f32.mrf.mxu2 }
 0x1b1   :  { %460 = dma.done.wait [#allocation4], 128  }
 0x1b2   :  { %461 = vsyncadd [#allocation4], 4294967168 }
 0x1b3   :  { %263 = vsyncpa [#allocation3], 1 }
 0x1b4   :  { %264 = vsyncpa [#allocation6], 1 }
 0x1b5   :  { %265 = vsyncpa [#allocation4], 1 }

</bundles_post_ra>
